<compile_context>
chip_gen: v6e
topology: v6e:2x2x1
jax: 0.10.0
libtpu: 0.0.40
codegen_flags: <defaults>
</compile_context>

<pallas_src>
import functools

import jax
import jax.numpy as jnp
from jax.experimental import pallas as pl
from jax.experimental.pallas import tpu as pltpu

_LANE = 128  # vreg lane width; also MXU-friendly tile width


def _round_up(n, m):
    return ((n + m - 1) // m) * m


def _pad2d(a, rows, cols):
    r, c = a.shape
    if r == rows and c == cols:
        return a
    return jnp.pad(a, ((0, rows - r), (0, cols - c)))


# --------------------------------------------------------------------------- #
# Kernel body
# --------------------------------------------------------------------------- #
def _gcn_fused_body(adj_ref, x_ref, w1_ref, b1_ref, w2_ref, b2_ref, out_ref,
                    bits_ref, *, dropout_rate, compute_dtype):
    adj = adj_ref[...]

    # ---- Layer 1: h = relu(adj @ (x @ W1) + b1)  (narrow projection first) ----
    s1 = jnp.dot(x_ref[...], w1_ref[...], preferred_element_type=jnp.float32)
    h = jnp.dot(adj, s1.astype(compute_dtype), preferred_element_type=jnp.float32)
    h = jnp.maximum(h + b1_ref[...], 0.0)

    # ---- Dropout (training variant only; compiled out in eval) ----
    if bits_ref is not None and dropout_rate > 0.0:
        keep_prob = 1.0 - float(dropout_rate)
        # 32-bit integer threshold compare on the raw random bits: keep prob = 1-p.
        thr = jnp.uint32(min(int(round(keep_prob * 2.0 ** 32)), (1 << 32) - 1))
        keep = bits_ref[...] < thr
        h = jnp.where(keep, h * (1.0 / keep_prob), 0.0)

    # ---- Layer 2: out = adj @ (h @ W2) + b2 ----
    s2 = jnp.dot(h.astype(compute_dtype), w2_ref[...],
                 preferred_element_type=jnp.float32)
    out = jnp.dot(adj, s2.astype(compute_dtype),
                  preferred_element_type=jnp.float32) + b2_ref[...]
    out_ref[...] = out.astype(out_ref.dtype)


def _gcn_eval_kernel(adj_ref, x_ref, w1_ref, b1_ref, w2_ref, b2_ref, out_ref, *,
                     compute_dtype):
    _gcn_fused_body(adj_ref, x_ref, w1_ref, b1_ref, w2_ref, b2_ref, out_ref,
                    None, dropout_rate=0.0, compute_dtype=compute_dtype)


def _gcn_train_kernel(adj_ref, x_ref, w1_ref, b1_ref, w2_ref, b2_ref, bits_ref,
                      out_ref, *, dropout_rate, compute_dtype):
    _gcn_fused_body(adj_ref, x_ref, w1_ref, b1_ref, w2_ref, b2_ref, out_ref,
                    bits_ref, dropout_rate=dropout_rate,
                    compute_dtype=compute_dtype)


# --------------------------------------------------------------------------- #
# Wrapper: one-time padding (hoisted out of the forward path) + forward call
# --------------------------------------------------------------------------- #
def pad_gcn_inputs(x, adj, params, *, compute_dtype=jnp.float32):
    """Pad/cast all operands ONCE (not per forward call). Zero padding is exact:
    padded adj rows/cols are zero, so padded h rows (= relu(b1)) never contribute
    to real output rows; padded output rows/cols are sliced away by the caller."""
    w1, b1, w2, b2 = params
    n, f_in = x.shape
    nhid = w1.shape[1]
    nclass = w2.shape[1]

    n_p = _round_up(n, _LANE)          # lane-multiple N: unmasked adj tiles,
    f_in_p = _round_up(f_in, _LANE)    # full-width MXU contraction dims.
    nhid_p = _round_up(nhid, _LANE)
    nclass_p = _round_up(nclass, _LANE)

    x_p = _pad2d(x, n_p, f_in_p).astype(compute_dtype)
    adj_p = _pad2d(adj, n_p, n_p).astype(compute_dtype)
    w1_p = _pad2d(w1, f_in_p, nhid_p).astype(compute_dtype)
    b1_p = _pad2d(b1.reshape(1, -1), 1, nhid_p).astype(jnp.float32)
    w2_p = _pad2d(w2, nhid_p, nclass_p).astype(compute_dtype)
    b2_p = _pad2d(b2.reshape(1, -1), 1, nclass_p).astype(jnp.float32)

    return x_p, adj_p, (w1_p, b1_p, w2_p, b2_p), (n, nclass)


def _maybe_compiler_params(*arrays, out_bytes):
    """Explicit VMEM limit sized to the resident footprint (v5e default is 16 MiB).
    Only attach Mosaic params when actually running on TPU hardware."""
    if jax.devices()[0].platform != "tpu":
        return None
    resident = sum(int(a.size) * a.dtype.itemsize for a in arrays) + out_bytes
    limit = min(max(2 * resident + (4 << 20), 8 << 20), 100 << 20)
    return pltpu.CompilerParams(vmem_limit_bytes=int(limit))


def gcn_forward_padded(x_p, adj_p, params_p, *, dropout_rate, dropout_bits=None,
                       compute_dtype=jnp.float32):
    """GCN forward on pre-padded operands. Returns PADDED logits (n_p, nclass_p).

    dropout_bits: optional uint32 array of shape (n_p, nhid_p) of random bits
    (training mode). When None, dropout is identity (eval mode).
    """
    w1_p, b1_p, w2_p, b2_p = params_p
    n_p = adj_p.shape[0]
    nclass_p = w2_p.shape[1]

    vmem = pl.BlockSpec(memory_space=pltpu.MemorySpace.VMEM)
    out_shape = jax.ShapeDtypeStruct((n_p, nclass_p), jnp.float32)
    out_bytes = n_p * nclass_p * 4

    if dropout_bits is not None and dropout_rate > 0.0:
        kernel = functools.partial(_gcn_train_kernel,
                                   dropout_rate=float(dropout_rate),
                                   compute_dtype=compute_dtype)
        cp = _maybe_compiler_params(adj_p, x_p, w1_p, b1_p, w2_p, b2_p,
                                    dropout_bits, out_bytes=out_bytes)
        return pl.pallas_call(
            kernel,
            out_shape=out_shape,
            in_specs=[vmem] * 7,   # adj, x, W1, b1, W2, b2, bits
            out_specs=vmem,
            compiler_params=cp,
        )(adj_p, x_p, w1_p, b1_p, w2_p, b2_p, dropout_bits)

    kernel = functools.partial(_gcn_eval_kernel, compute_dtype=compute_dtype)
    cp = _maybe_compiler_params(adj_p, x_p, w1_p, b1_p, w2_p, b2_p,
                                out_bytes=out_bytes)
    return pl.pallas_call(
        kernel,
        out_shape=out_shape,
        in_specs=[vmem] * 6,
        out_specs=vmem,
        compiler_params=cp,
    )(adj_p, x_p, w1_p, b1_p, w2_p, b2_p)


def init_params(key, nfeat, nhid, nclass):
    """Deterministic init matching GraphConvolution.reset_parameters:
       uniform(-1/sqrt(out_features), 1/sqrt(out_features)) for W and b."""
    k1, k2, k3, k4 = jax.random.split(key, 4)
    s1 = 1.0 / (nhid ** 0.5)
    s2 = 1.0 / (nclass ** 0.5)
    w1 = jax.random.uniform(k1, (nfeat, nhid), jnp.float32, -s1, s1)
    b1 = jax.random.uniform(k2, (1, nhid), jnp.float32, -s1, s1)
    w2 = jax.random.uniform(k3, (nhid, nclass), jnp.float32, -s2, s2)
    b2 = jax.random.uniform(k4, (1, nclass), jnp.float32, -s2, s2)
    return w1, b1, w2, b2


def reference_forward(x, adj, params):
    # Pure-JAX reference (eval mode: dropout = identity).
    w1, b1, w2, b2 = params
    h = jnp.maximum(adj @ (x @ w1) + b1, 0.0)
    return adj @ (h @ w2) + b2


if __name__ == "__main__":
    key = jax.random.PRNGKey(0)
    N, NFEAT, NHID, NCLASS = 64, 32, 32, 8
    DROPOUT = 0.5

    k_x, k_a, k_p, k_d = jax.random.split(key, 4)

    # Node features.
    x = jax.random.normal(k_x, (N, NFEAT), jnp.float32)

    # Symmetrically-normalized adjacency with self-loops (deterministic).
    a = (jax.random.uniform(k_a, (N, N)) < 0.1).astype(jnp.float32)
    a = jnp.maximum(a, a.T) + jnp.eye(N, dtype=jnp.float32)
    d_inv_sqrt = 1.0 / jnp.sqrt(a.sum(axis=1))
    adj = a * d_inv_sqrt[:, None] * d_inv_sqrt[None, :]

    params = init_params(k_p, NFEAT, NHID, NCLASS)
    ref = reference_forward(x, adj, params)

    # --- One-time padding / casting (hoisted out of the forward path) ----------
    x_f32, adj_f32, params_f32, (n, nclass) = pad_gcn_inputs(
        x, adj, params, compute_dtype=jnp.float32)
    x_bf16, adj_bf16, params_bf16, _ = pad_gcn_inputs(
        x, adj, params, compute_dtype=jnp.bfloat16)

    # --- Eval-mode forward, f32 MXU path (dropout is identity: model.eval()) ---
    out_p = gcn_forward_padded(x_f32, adj_f32, params_f32, dropout_rate=DROPOUT)
    out_p = jax.block_until_ready(out_p)
    out = out_p[:n, :nclass]
    assert out.shape == (N, NCLASS)
    assert jnp.allclose(out, ref, atol=1e-4, rtol=1e-4)

    # --- Eval-mode forward, bf16 MXU inputs (2x MXU throughput), looser check ---
    out_bf16_p = gcn_forward_padded(x_bf16, adj_bf16, params_bf16,
                                    dropout_rate=DROPOUT,
                                    compute_dtype=jnp.bfloat16)
    out_bf16_p = jax.block_until_ready(out_bf16_p)
    out_bf16 = out_bf16_p[:n, :nclass]
    assert out_bf16.shape == (N, NCLASS)
    assert jnp.allclose(out_bf16, ref, atol=1e-1, rtol=1e-1)

    # --- Training-mode smoke test (inverted dropout, keep prob 1-p) ------------
    # TODO(synk): dropout bits come from jax.random (host-side) rather than the TPU
    # hardware PRNG (pltpu.prng_*) because the latter has no CPU-interpret lowering;
    # the mask will not bit-match torch's RNG sequence, semantics match.
    n_p, nhid_p = adj_f32.shape[0], params_f32[0].shape[1]
    drop_bits = jax.random.bits(k_d, (n_p, nhid_p), dtype=jnp.uint32)
    out_tr_p = gcn_forward_padded(x_f32, adj_f32, params_f32,
                                  dropout_rate=DROPOUT, dropout_bits=drop_bits)
    out_tr_p = jax.block_until_ready(out_tr_p)
    out_tr = out_tr_p[:n, :nclass]
    assert out_tr.shape == (N, NCLASS)
    assert bool(jnp.all(jnp.isfinite(out_tr)))

    print("KERNEL_OK")
</pallas_src>

<mosaic_0001>
module attributes {stable_mosaic.version = 11 : i64} {
  func.func @_gcn_eval_kernel(%arg0: memref<128x128xf32, #tpu.memory_space<vmem>>, %arg1: memref<128x128xf32, #tpu.memory_space<vmem>>, %arg2: memref<128x128xf32, #tpu.memory_space<vmem>>, %arg3: memref<1x128xf32, #tpu.memory_space<vmem>>, %arg4: memref<128x128xf32, #tpu.memory_space<vmem>>, %arg5: memref<1x128xf32, #tpu.memory_space<vmem>>, %arg6: memref<128x128xf32, #tpu.memory_space<vmem>>) attributes {dimension_semantics = [], scalar_prefetch = 0 : i64, scratch_operands = 0 : i64, tpu.core_type = #tpu.core_type<tc>} {
    %c0 = arith.constant 0 : index
    %c0_0 = arith.constant 0 : index
    %0 = vector.load %arg0[%c0, %c0_0] : memref<128x128xf32, #tpu.memory_space<vmem>>, vector<128x128xf32>
    %c0_1 = arith.constant 0 : index
    %c0_2 = arith.constant 0 : index
    %1 = vector.load %arg1[%c0_1, %c0_2] : memref<128x128xf32, #tpu.memory_space<vmem>>, vector<128x128xf32>
    %c0_3 = arith.constant 0 : index
    %c0_4 = arith.constant 0 : index
    %2 = vector.load %arg2[%c0_3, %c0_4] : memref<128x128xf32, #tpu.memory_space<vmem>>, vector<128x128xf32>
    %cst = arith.constant dense<0.000000e+00> : vector<128x128xf32>
    %3 = tpu.matmul %1, %2, %cst {dimension_numbers = #tpu.dot_dimension_numbers<[1], [0], [0], [1], [0, 0, 1, 1], [], []>} : vector<128x128xf32>, vector<128x128xf32>, vector<128x128xf32> -> vector<128x128xf32>
    %cst_5 = arith.constant dense<0.000000e+00> : vector<128x128xf32>
    %4 = tpu.matmul %0, %3, %cst_5 {dimension_numbers = #tpu.dot_dimension_numbers<[1], [0], [0], [1], [0, 0, 1, 1], [], []>} : vector<128x128xf32>, vector<128x128xf32>, vector<128x128xf32> -> vector<128x128xf32>
    %c0_6 = arith.constant 0 : index
    %c0_7 = arith.constant 0 : index
    %5 = vector.load %arg3[%c0_6, %c0_7] : memref<1x128xf32, #tpu.memory_space<vmem>>, vector<1x128xf32>
    %6 = vector.broadcast %5 : vector<1x128xf32> to vector<128x128xf32>
    %7 = arith.addf %4, %6 : vector<128x128xf32>
    %cst_8 = arith.constant 0.000000e+00 : f32
    %8 = vector.broadcast %cst_8 : f32 to vector<128x128xf32>
    %9 = arith.maximumf %7, %8 : vector<128x128xf32>
    %c0_9 = arith.constant 0 : index
    %c0_10 = arith.constant 0 : index
    %10 = vector.load %arg4[%c0_9, %c0_10] : memref<128x128xf32, #tpu.memory_space<vmem>>, vector<128x128xf32>
    %cst_11 = arith.constant dense<0.000000e+00> : vector<128x128xf32>
    %11 = tpu.matmul %9, %10, %cst_11 {dimension_numbers = #tpu.dot_dimension_numbers<[1], [0], [0], [1], [0, 0, 1, 1], [], []>} : vector<128x128xf32>, vector<128x128xf32>, vector<128x128xf32> -> vector<128x128xf32>
    %cst_12 = arith.constant dense<0.000000e+00> : vector<128x128xf32>
    %12 = tpu.matmul %0, %11, %cst_12 {dimension_numbers = #tpu.dot_dimension_numbers<[1], [0], [0], [1], [0, 0, 1, 1], [], []>} : vector<128x128xf32>, vector<128x128xf32>, vector<128x128xf32> -> vector<128x128xf32>
    %c0_13 = arith.constant 0 : index
    %c0_14 = arith.constant 0 : index
    %13 = vector.load %arg5[%c0_13, %c0_14] : memref<1x128xf32, #tpu.memory_space<vmem>>, vector<1x128xf32>
    %14 = vector.broadcast %13 : vector<1x128xf32> to vector<128x128xf32>
    %15 = arith.addf %12, %14 : vector<128x128xf32>
    %c0_15 = arith.constant 0 : index
    %c0_16 = arith.constant 0 : index
    %16 = vector.load %arg6[%c0_15, %c0_16] : memref<128x128xf32, #tpu.memory_space<vmem>>, vector<128x128xf32>
    tpu.vector_store %arg6[%c0_15, %c0_16], %15 {strides = array<i32>} : memref<128x128xf32, #tpu.memory_space<vmem>>, vector<128x128xf32>,
    return
  }
}

</mosaic_0001>

<bundles_post_ra>
// kernel: tpu_custom_call.1
= control target key start
LH: loop header
LB: loop body
LE: loop exit
PB: predicated region body
PF: predicated region fallthrough
CT: control target
= control target key end

     0   :  { %11 = vsyncpa [#allocation3], 0  ;;  %s1399_s0 = inlined_call_operand.hbm [shape: f32[128,128], index: 0, kind: input, shape index: {}]   ;;  %s1400_s1 = inlined_call_operand.hbm [shape: f32[128,128], index: 1, kind: input, shape index: {}]   ;;  %s1401_s2 = inlined_call_operand.hbm [shape: f32[128,128], index: 2, kind: input, shape index: {}]   ;;  %s1402_s3 = inlined_call_operand.vmem [shape: f32[1,128], index: 3, kind: input, shape index: {}]   ;;  %s1403_s4 = inlined_call_operand.hbm [shape: f32[128,128], index: 4, kind: input, shape index: {}]   ;;  %s1404_s5 = inlined_call_operand.vmem [shape: f32[1,128], index: 5, kind: input, shape index: {}]   ;;  %s1405_s6 = inlined_call_operand.hbm [shape: f32[128,128], index: 6, kind: output, shape index: {}]  }
   0x1   :  { %12 = vsyncpa [#allocation6], 0 }
   0x2   :  { %13 = vsyncpa [#allocation9], 0 }
   0x3   :  { %14 = vsyncpa [#allocation4], 0  ;;  %s1257_s21 = smov [#allocation5]   ;;  %s1258_s23 = smov [#allocation2]  }
   0x4   :  { %s32_s22 = sshll.u32 %s1257_s21, 4  ;;  %s20_s24 = sshll.u32 %s1258_s23, 4  ;;  %s33_s22 = int_to_ptr.vmem [resolvable:$true] %s32_s22  ;;  %s21_s24 = int_to_ptr.vmem [resolvable:$true] %s20_s24 }
   0x5   :  { %s1157_s25 = scalar_lea.vmem %s33_s22, 2048  ;;  %p1162_p1 = scmp.lt.s32.totalorder %s33_s22, %s33_s22 }
   0x6   :  { %p1158_p0 = scmp.ne.s32.totalorder %s33_s22, %s1157_s25  ;;  %p1163_p2 = scmp.lt.s32.totalorder %s1157_s25, %s1157_s25 }
   0x8   :  { %p1164_p3 = por %p1163_p2, %p1162_p1 }
   0xa   :  { %p1165_p4 = pnand %p1164_p3, %p1158_p0 }
   0xc   :  { %1168 = shalt.err (!%p1165_p4)
}
   0xd   :  { %s1259_s26 = smov 128   ;;  %s1260_s27 = smov 8  }
   0xe   :  { %38 = dma.hbm_to_vmem [thread:$0]  %s1400_s1, 2048, %s33_s22, [#allocation6], %s1259_s26, %s1259_s26, %s1260_s27  }
   0xf   :  { %s1177_s30 = scalar_lea.vmem %s21_s24, 2048  ;;  %p1182_p6 = scmp.lt.s32.totalorder %s21_s24, %s21_s24 }
  0x10   :  { %p1178_p5 = scmp.ne.s32.totalorder %s21_s24, %s1177_s30  ;;  %p1183_p7 = scmp.lt.s32.totalorder %s1177_s30, %s1177_s30 }
  0x12   :  { %p1184_p8 = por %p1183_p7, %p1182_p6 }
  0x14   :  { %p1185_p9 = pnand %p1184_p8, %p1178_p5 }
  0x16   :  { %1188 = shalt.err (!%p1185_p9)
}
  0x17   :  { %26 = dma.hbm_to_vmem [thread:$0]  %s1399_s0, 2048, %s21_s24, [#allocation3], %s1259_s26, %s1259_s26, %s1260_s27  }
  0x18   :  { %s1261_s9 = smov [#allocation7]   ;;  %s1262_s11 = smov [#allocation8]  }
  0x19   :  { %s44_s10 = sshll.u32 %s1261_s9, 4  ;;  %s58_s12 = sshll.u32 %s1262_s11, 4  ;;  %s45_s10 = int_to_ptr.vmem [resolvable:$true] %s44_s10  ;;  %s59_s12 = int_to_ptr.vmem [resolvable:$true] %s58_s12 }
  0x1a   :  { %s1197_s1 = scalar_lea.vmem %s45_s10, 2048  ;;  %p1202_p11 = scmp.lt.s32.totalorder %s45_s10, %s45_s10 }
  0x1b   :  { %p1198_p10 = scmp.ne.s32.totalorder %s45_s10, %s1197_s1  ;;  %p1203_p12 = scmp.lt.s32.totalorder %s1197_s1, %s1197_s1 }
  0x1d   :  { %p1204_p13 = por %p1203_p12, %p1202_p11 }
  0x1f   :  { %p1205_p0 = pnand %p1204_p13, %p1198_p10 }
  0x21   :  { %1208 = shalt.err (!%p1205_p0)
}
  0x22   :  { %50 = dma.hbm_to_vmem [thread:$0]  %s1401_s2, 2048, %s45_s10, [#allocation6], %s1259_s26, %s1259_s26, %s1260_s27  }
  0x23   :  { %s1217_s0 = scalar_lea.vmem %s59_s12, 2048  ;;  %p1222_p2 = scmp.lt.s32.totalorder %s59_s12, %s59_s12 }
  0x24   :  { %p1218_p1 = scmp.ne.s32.totalorder %s59_s12, %s1217_s0  ;;  %p1223_p3 = scmp.lt.s32.totalorder %s1217_s0, %s1217_s0 }
  0x26   :  { %p1224_p4 = por %p1223_p3, %p1222_p2 }
  0x28   :  { %p1225_p5 = pnand %p1224_p4, %p1218_p1 }
  0x2a   :  { %1228 = shalt.err (!%p1225_p5)
}
  0x2b   :  { %64 = dma.hbm_to_vmem [thread:$0]  %s1403_s4, 2048, %s59_s12, [#allocation9], %s1259_s26, %s1259_s26, %s1260_s27  }
  0x2c   :  { %1249 = dma.done.wait [#allocation3], 2048  }
  0x2d   :  { %1250 = vsyncadd [#allocation3], 4294965248 }
  0x2e   :  { %1251 = dma.done.wait [#allocation6], 4096  }
  0x2f   :  { %1252 = vsyncadd [#allocation6], 4294963200 }
  0x30   :  { %1253 = dma.done.wait [#allocation9], 2048  }
  0x31   :  { %1254 = vsyncadd [#allocation9], 4294965248  ;;  %v126_v0 = vld [vmem:[#allocation7 + $0x78] sm:$0xff]  ;;  %v125_v1 = vld [vmem:[#allocation7 + $0x70] sm:$0xff] }
  0x32   :  { %918 = vmatprep.subr.mxu0 %v126_v0  ;;  %v124_v2 = vld [vmem:[#allocation7 + $0x68] sm:$0xff]  ;;  %v123_v3 = vld [vmem:[#allocation7 + $0x60] sm:$0xff]  ;;  %v122_v5 = vld [vmem:[#allocation7 + $0x58] sm:$0xff] }
  0x33   :  { %919 = vmatpush3.msra.mxu0 %v126_v0  ;;  %v95_v4 = vld [vmem:[#allocation5] sm:$0xff]  ;;  %v121_v6 = vld [vmem:[#allocation7 + $0x50] sm:$0xff]  ;;  %v120_v7 = vld [vmem:[#allocation7 + $0x48] sm:$0xff] }
  0x34   :  { %920 = vmatprep.subr.mxu0 %v125_v1  ;;  %950 = vmatprep.mubr.f32.mxu0 %v95_v4  ;;  %v119_v8 = vld [vmem:[#allocation7 + $0x40] sm:$0xff]  ;;  %v118_v9 = vld [vmem:[#allocation7 + $0x38] sm:$0xff]  ;;  %v117_v10 = vld [vmem:[#allocation7 + $0x30] sm:$0xff] }
  0x35   :  { %921 = vmatpush3.msra.mxu0 %v125_v1  ;;  %v116_v11 = vld [vmem:[#allocation7 + $0x28] sm:$0xff]  ;;  %v115_v12 = vld [vmem:[#allocation7 + $0x20] sm:$0xff]  ;;  %v114_v13 = vld [vmem:[#allocation7 + $0x18] sm:$0xff] }
  0x36   :  { %922 = vmatprep.subr.mxu0 %v124_v2  ;;  %v113_v14 = vld [vmem:[#allocation7 + $0x10] sm:$0xff]  ;;  %v112_v15 = vld [vmem:[#allocation7 + $0x8] sm:$0xff]  ;;  %v111_v16 = vld [vmem:[#allocation7] sm:$0xff] }
  0x37   :  { %923 = vmatpush3.msra.mxu0 %v124_v2  ;;  %v96_v17 = vld [vmem:[#allocation5 + $0x8] sm:$0xff]  ;;  %v97_v18 = vld [vmem:[#allocation5 + $0x10] sm:$0xff]  ;;  %v98_v19 = vld [vmem:[#allocation5 + $0x18] sm:$0xff] }
  0x38   :  { %924 = vmatprep.subr.mxu0 %v123_v3  ;;  %v99_v20 = vld [vmem:[#allocation5 + $0x20] sm:$0xff]  ;;  %v100_v21 = vld [vmem:[#allocation5 + $0x28] sm:$0xff]  ;;  %v101_v22 = vld [vmem:[#allocation5 + $0x30] sm:$0xff] }
  0x39   :  { %925 = vmatpush3.msra.mxu0 %v123_v3  ;;  %v102_v23 = vld [vmem:[#allocation5 + $0x38] sm:$0xff]  ;;  %v103_v24 = vld [vmem:[#allocation5 + $0x40] sm:$0xff]  ;;  %v104_v25 = vld [vmem:[#allocation5 + $0x48] sm:$0xff] }
  0x3a   :  { %926 = vmatprep.subr.mxu0 %v122_v5  ;;  %v105_v26 = vld [vmem:[#allocation5 + $0x50] sm:$0xff]  ;;  %v106_v27 = vld [vmem:[#allocation5 + $0x58] sm:$0xff]  ;;  %v107_v28 = vld [vmem:[#allocation5 + $0x60] sm:$0xff] }
  0x3b   :  { %927 = vmatpush3.msra.mxu0 %v122_v5  ;;  %v108_v29 = vld [vmem:[#allocation5 + $0x68] sm:$0xff]  ;;  %v109_v30 = vld [vmem:[#allocation5 + $0x70] sm:$0xff]  ;;  %v110_v31 = vld [vmem:[#allocation5 + $0x78] sm:$0xff] }
  0x3c   :  { %928 = vmatprep.subr.mxu0 %v121_v6  ;;  %v1323_v32 = vld [vmem:[#allocation2] sm:$0xff]  ;;  %v455_v33 = vld [vmem:[#allocation8 + $0x78] sm:$0xff]  ;;  %v454_v34 = vld [vmem:[#allocation8 + $0x70] sm:$0xff] }
  0x3d   :  { %929 = vmatpush3.msra.mxu0 %v121_v6  ;;  %1006 = vmatprep.mubr.f32.mxu1 %v1323_v32  ;;  %v453_v35 = vld [vmem:[#allocation8 + $0x68] sm:$0xff]  ;;  %v452_v36 = vld [vmem:[#allocation8 + $0x60] sm:$0xff]  ;;  %v451_v37 = vld [vmem:[#allocation8 + $0x58] sm:$0xff] }
  0x3e   :  { %930 = vmatprep.subr.mxu0 %v120_v7  ;;  %v450_v38 = vld [vmem:[#allocation8 + $0x50] sm:$0xff]  ;;  %v449_v39 = vld [vmem:[#allocation8 + $0x48] sm:$0xff]  ;;  %v448_v40 = vld [vmem:[#allocation8 + $0x40] sm:$0xff] }
  0x3f   :  { %931 = vmatpush3.msra.mxu0 %v120_v7  ;;  %v447_v41 = vld [vmem:[#allocation8 + $0x38] sm:$0xff]  ;;  %v446_v42 = vld [vmem:[#allocation8 + $0x30] sm:$0xff]  ;;  %v445_v43 = vld [vmem:[#allocation8 + $0x28] sm:$0xff] }
  0x40   :  { %932 = vmatprep.subr.mxu0 %v119_v8  ;;  %v444_v44 = vld [vmem:[#allocation8 + $0x20] sm:$0xff]  ;;  %v1326_v61 = vld [vmem:[#allocation2 + $0x8] sm:$0xff]  ;;  %v1328_v62 = vld [vmem:[#allocation2 + $0x10] sm:$0xff] }
  0x41   :  { %933 = vmatpush3.msra.mxu0 %v119_v8  ;;  %v1332_v63 = vld [vmem:[#allocation2 + $0x18] sm:$0xff]  ;;  %v1334_v0 = vld [vmem:[#allocation2 + $0x20] sm:$0xff]  ;;  %v1338_v1 = vld [vmem:[#allocation2 + $0x28] sm:$0xff] }
  0x42   :  { %934 = vmatprep.subr.mxu0 %v118_v9  ;;  %v1340_v2 = vld [vmem:[#allocation2 + $0x30] sm:$0xff]  ;;  %v1344_v3 = vld [vmem:[#allocation2 + $0x38] sm:$0xff]  ;;  %v1346_v4 = vld [vmem:[#allocation2 + $0x40] sm:$0xff] }
  0x43   :  { %935 = vmatpush3.msra.mxu0 %v118_v9  ;;  %v1350_v5 = vld [vmem:[#allocation2 + $0x48] sm:$0xff]  ;;  %v1352_v6 = vld [vmem:[#allocation2 + $0x50] sm:$0xff]  ;;  %v1356_v7 = vld [vmem:[#allocation2 + $0x58] sm:$0xff] }
  0x44   :  { %936 = vmatprep.subr.mxu0 %v117_v10  ;;  %v1358_v8 = vld [vmem:[#allocation2 + $0x60] sm:$0xff]  ;;  %v1362_v9 = vld [vmem:[#allocation2 + $0x68] sm:$0xff] }
  0x45   :  { %937 = vmatpush3.msra.mxu0 %v117_v10  ;;  %v1364_v10 = vld [vmem:[#allocation2 + $0x70] sm:$0xff] }
  0x46   :  { %938 = vmatprep.subr.mxu0 %v116_v11 }
  0x47   :  { %939 = vmatpush3.msra.mxu0 %v116_v11  ;;  %v1368_v11 = vld [vmem:[#allocation2 + $0x78] sm:$0xff] }
  0x48   :  { %940 = vmatprep.subr.mxu0 %v115_v12 }
  0x49   :  { %941 = vmatpush3.msra.mxu0 %v115_v12  ;;  %v443_v12 = vld [vmem:[#allocation8 + $0x18] sm:$0xff] }
  0x4a   :  { %942 = vmatprep.subr.mxu0 %v114_v13 }
  0x4b   :  { %943 = vmatpush3.msra.mxu0 %v114_v13  ;;  %v442_v13 = vld [vmem:[#allocation8 + $0x10] sm:$0xff] }
  0x4c   :  { %944 = vmatprep.subr.mxu0 %v113_v14 }
  0x4d   :  { %945 = vmatpush3.msra.mxu0 %v113_v14  ;;  %v441_v14 = vld [vmem:[#allocation8 + $0x8] sm:$0xff] }
  0x4e   :  { %946 = vmatprep.subr.mxu0 %v112_v15 }
  0x4f   :  { %947 = vmatpush3.msra.mxu0 %v112_v15  ;;  %v440_v15 = vld [vmem:[#allocation8] sm:$0xff] }
  0x50   :  { %948 = vmatprep.subr.mxu0 %v111_v16 }
  0x51   :  { %949 = vmatpush3.msra.mxu0 %v111_v16  ;;  %v788_v16 = vld [vmem:[%s1402_s3] ss:$0 sm:$0xff] }
  0x52   :  { %951 = vmatmul.mubr.f32.vlgmr.msra.gmra.mxu0 %v96_v17  ;;  %1030 = vmatprep.subr.mxu0 %v455_v33 }
  0x53   :  { %953 = vmatprep.mubr.f32.mxu0 %v97_v18  ;;  %1031 = vmatpush3.msra.mxu0 %v455_v33 }
  0x54   :  { %1032 = vmatprep.subr.mxu0 %v454_v34 }
  0x55   :  { %1033 = vmatpush3.msra.mxu0 %v454_v34 }
  0x56   :  { %954 = vmatmul.mubr.f32.gmra.mxu0 %v98_v19  ;;  %1034 = vmatprep.subr.mxu0 %v453_v35 }
  0x57   :  { %956 = vmatprep.mubr.f32.mxu0 %v99_v20  ;;  %1035 = vmatpush3.msra.mxu0 %v453_v35 }
  0x58   :  { %1036 = vmatprep.subr.mxu0 %v452_v36 }
  0x59   :  { %1037 = vmatpush3.msra.mxu0 %v452_v36 }
  0x5a   :  { %957 = vmatmul.mubr.f32.gmra.mxu0 %v100_v21  ;;  %1038 = vmatprep.subr.mxu0 %v451_v37 }
  0x5b   :  { %959 = vmatprep.mubr.f32.mxu0 %v101_v22  ;;  %1039 = vmatpush3.msra.mxu0 %v451_v37 }
  0x5c   :  { %1040 = vmatprep.subr.mxu0 %v450_v38 }
  0x5d   :  { %1041 = vmatpush3.msra.mxu0 %v450_v38 }
  0x5e   :  { %960 = vmatmul.mubr.f32.gmra.mxu0 %v102_v23  ;;  %1042 = vmatprep.subr.mxu0 %v449_v39 }
  0x5f   :  { %962 = vmatprep.mubr.f32.mxu0 %v103_v24  ;;  %1043 = vmatpush3.msra.mxu0 %v449_v39 }
  0x60   :  { %1044 = vmatprep.subr.mxu0 %v448_v40 }
  0x61   :  { %1045 = vmatpush3.msra.mxu0 %v448_v40 }
  0x62   :  { %963 = vmatmul.mubr.f32.gmra.mxu0 %v104_v25  ;;  %1046 = vmatprep.subr.mxu0 %v447_v41 }
  0x63   :  { %965 = vmatprep.mubr.f32.mxu0 %v105_v26  ;;  %1047 = vmatpush3.msra.mxu0 %v447_v41 }
  0x64   :  { %1048 = vmatprep.subr.mxu0 %v446_v42 }
  0x65   :  { %1049 = vmatpush3.msra.mxu0 %v446_v42 }
  0x66   :  { %966 = vmatmul.mubr.f32.gmra.mxu0 %v106_v27  ;;  %1050 = vmatprep.subr.mxu0 %v445_v43 }
  0x67   :  { %968 = vmatprep.mubr.f32.mxu0 %v107_v28  ;;  %1051 = vmatpush3.msra.mxu0 %v445_v43 }
  0x68   :  { %1052 = vmatprep.subr.mxu0 %v444_v44 }
  0x69   :  { %1053 = vmatpush3.msra.mxu0 %v444_v44 }
  0x6a   :  { %969 = vmatmul.mubr.f32.gmra.mxu0 %v108_v29  ;;  %1054 = vmatprep.subr.mxu0 %v443_v12 }
  0x6b   :  { %971 = vmatprep.mubr.f32.mxu0 %v109_v30  ;;  %1055 = vmatpush3.msra.mxu0 %v443_v12 }
  0x6c   :  { %1056 = vmatprep.subr.mxu0 %v442_v13 }
  0x6d   :  { %1057 = vmatpush3.msra.mxu0 %v442_v13 }
  0x6e   :  { %972 = vmatmul.mubr.f32.gmra.mxu0 %v110_v31  ;;  %1058 = vmatprep.subr.mxu0 %v441_v14 }
  0x6f   :  { %1059 = vmatpush3.msra.mxu0 %v441_v14 }
  0x70   :  { %1060 = vmatprep.subr.mxu0 %v440_v15 }
  0x71   :  { %1061 = vmatpush3.msra.mxu0 %v440_v15 }
 0x112   :  { %v952_v45 = vpop.f32.mrf.mxu0 }
 0x114   :  { %v193_v46 = vpop.f32.mrf.mxu0 }
 0x116   :  { %v955_v47 = vpop.f32.mrf.mxu0 }
 0x118   :  { %v203_v48 = vpop.f32.mrf.mxu0 }
 0x11a   :  { %v958_v49 = vpop.f32.mrf.mxu0 }
 0x11c   :  { %v213_v50 = vpop.f32.mrf.mxu0 }
 0x11e   :  { %v961_v51 = vpop.f32.mrf.mxu0 }
 0x120   :  { %v223_v52 = vpop.f32.mrf.mxu0 }
 0x122   :  { %v964_v53 = vpop.f32.mrf.mxu0 }
 0x124   :  { %v233_v54 = vpop.f32.mrf.mxu0 }
 0x126   :  { %v967_v55 = vpop.f32.mrf.mxu0 }
 0x128   :  { %v243_v56 = vpop.f32.mrf.mxu0 }
 0x12a   :  { %v970_v57 = vpop.f32.mrf.mxu0 }
 0x12c   :  { %v253_v58 = vpop.f32.mrf.mxu0 }
 0x12e   :  { %v973_v59 = vpop.f32.mrf.mxu0 }
 0x12f   :  { %974 = vmatprep.subr.mxu1 %v973_v59 }
 0x130   :  { %v263_v60 = vpop.f32.mrf.mxu0  ;;  %975 = vmatpush3.msra.mxu1 %v973_v59 }
 0x131   :  { %976 = vmatprep.subr.mxu1 %v263_v60 }
 0x132   :  { %977 = vmatpush3.msra.mxu1 %v263_v60 }
 0x133   :  { %978 = vmatprep.subr.mxu1 %v970_v57 }
 0x134   :  { %979 = vmatpush3.msra.mxu1 %v970_v57 }
 0x135   :  { %980 = vmatprep.subr.mxu1 %v253_v58 }
 0x136   :  { %981 = vmatpush3.msra.mxu1 %v253_v58 }
 0x137   :  { %982 = vmatprep.subr.mxu1 %v967_v55 }
 0x138   :  { %983 = vmatpush3.msra.mxu1 %v967_v55 }
 0x139   :  { %984 = vmatprep.subr.mxu1 %v243_v56 }
 0x13a   :  { %985 = vmatpush3.msra.mxu1 %v243_v56 }
 0x13b   :  { %986 = vmatprep.subr.mxu1 %v964_v53 }
 0x13c   :  { %987 = vmatpush3.msra.mxu1 %v964_v53 }
 0x13d   :  { %988 = vmatprep.subr.mxu1 %v233_v54 }
 0x13e   :  { %989 = vmatpush3.msra.mxu1 %v233_v54 }
 0x13f   :  { %990 = vmatprep.subr.mxu1 %v961_v51 }
 0x140   :  { %991 = vmatpush3.msra.mxu1 %v961_v51 }
 0x141   :  { %992 = vmatprep.subr.mxu1 %v223_v52 }
 0x142   :  { %993 = vmatpush3.msra.mxu1 %v223_v52 }
 0x143   :  { %994 = vmatprep.subr.mxu1 %v958_v49 }
 0x144   :  { %995 = vmatpush3.msra.mxu1 %v958_v49 }
 0x145   :  { %996 = vmatprep.subr.mxu1 %v213_v50 }
 0x146   :  { %997 = vmatpush3.msra.mxu1 %v213_v50 }
 0x147   :  { %998 = vmatprep.subr.mxu1 %v955_v47 }
 0x148   :  { %999 = vmatpush3.msra.mxu1 %v955_v47 }
 0x149   :  { %1000 = vmatprep.subr.mxu1 %v203_v48 }
 0x14a   :  { %1001 = vmatpush3.msra.mxu1 %v203_v48 }
 0x14b   :  { %1002 = vmatprep.subr.mxu1 %v952_v45 }
 0x14c   :  { %1003 = vmatpush3.msra.mxu1 %v952_v45 }
 0x14d   :  { %1004 = vmatprep.subr.mxu1 %v193_v46 }
 0x14e   :  { %1005 = vmatpush3.msra.mxu1 %v193_v46 }
 0x14f   :  { %1007 = vmatmul.mubr.f32.vlgmr.msra.gmra.mxu1 %v1326_v61 }
 0x150   :  { %1009 = vmatprep.mubr.f32.mxu1 %v1328_v62 }
 0x153   :  { %1010 = vmatmul.mubr.f32.gmra.mxu1 %v1332_v63 }
 0x154   :  { %1012 = vmatprep.mubr.f32.mxu1 %v1334_v0 }
 0x157   :  { %1013 = vmatmul.mubr.f32.gmra.mxu1 %v1338_v1 }
 0x158   :  { %1015 = vmatprep.mubr.f32.mxu1 %v1340_v2 }
 0x15b   :  { %1016 = vmatmul.mubr.f32.gmra.mxu1 %v1344_v3 }
 0x15c   :  { %1018 = vmatprep.mubr.f32.mxu1 %v1346_v4 }
 0x15f   :  { %1019 = vmatmul.mubr.f32.gmra.mxu1 %v1350_v5 }
 0x160   :  { %1021 = vmatprep.mubr.f32.mxu1 %v1352_v6 }
 0x163   :  { %1022 = vmatmul.mubr.f32.gmra.mxu1 %v1356_v7 }
 0x164   :  { %1024 = vmatprep.mubr.f32.mxu1 %v1358_v8 }
 0x167   :  { %1025 = vmatmul.mubr.f32.gmra.mxu1 %v1362_v9 }
 0x168   :  { %1027 = vmatprep.mubr.f32.mxu1 %v1364_v10 }
 0x16b   :  { %1028 = vmatmul.mubr.f32.gmra.mxu1 %v1368_v11 }
 0x16c   :  { %1118 = vmatprep.mubr.f32.mxu1 %v1323_v32 }
 0x20f   :  { %v1008_v17 = vpop.f32.mrf.mxu1 }
 0x210   :  { %v351_v18 = vadd.f32 %v1008_v17, %v788_v16 }
 0x211   :  { %v345_v19 = vpop.f32.mrf.mxu1 }
 0x212   :  { %v346_v20 = vadd.f32 %v788_v16, %v345_v19  ;;  %v425_v23 = vmax.f32 %v351_v18, 0.0 }
 0x213   :  { %v1011_v21 = vpop.f32.mrf.mxu1 }
 0x214   :  { %v424_v22 = vmax.f32 %v346_v20, 0.0  ;;  %v361_v24 = vadd.f32 %v1011_v21, %v788_v16 }
 0x215   :  { %v355_v25 = vpop.f32.mrf.mxu1 }
 0x216   :  { %v356_v26 = vadd.f32 %v788_v16, %v355_v25  ;;  %1062 = vmatprep.mubr.f32.mxu0 %v424_v22  ;;  %v427_v29 = vmax.f32 %v361_v24, 0.0 }
 0x217   :  { %v1014_v27 = vpop.f32.mrf.mxu1  ;;  %1063 = vmatmul.mubr.f32.vlgmr.msra.gmra.mxu0 %v425_v23 }
 0x218   :  { %v426_v28 = vmax.f32 %v356_v26, 0.0  ;;  %v371_v30 = vadd.f32 %v1014_v27, %v788_v16 }
 0x219   :  { %v365_v31 = vpop.f32.mrf.mxu1 }
 0x21a   :  { %v366_v32 = vadd.f32 %v788_v16, %v365_v31  ;;  %1065 = vmatprep.mubr.f32.mxu0 %v426_v28  ;;  %v429_v35 = vmax.f32 %v371_v30, 0.0 }
 0x21b   :  { %v1017_v33 = vpop.f32.mrf.mxu1  ;;  %1066 = vmatmul.mubr.f32.gmra.mxu0 %v427_v29 }
 0x21c   :  { %v428_v34 = vmax.f32 %v366_v32, 0.0  ;;  %v381_v36 = vadd.f32 %v1017_v33, %v788_v16 }
 0x21d   :  { %v375_v37 = vpop.f32.mrf.mxu1 }
 0x21e   :  { %v376_v38 = vadd.f32 %v788_v16, %v375_v37  ;;  %1068 = vmatprep.mubr.f32.mxu0 %v428_v34  ;;  %v431_v41 = vmax.f32 %v381_v36, 0.0 }
 0x21f   :  { %v1020_v39 = vpop.f32.mrf.mxu1  ;;  %1069 = vmatmul.mubr.f32.gmra.mxu0 %v429_v35 }
 0x220   :  { %v430_v40 = vmax.f32 %v376_v38, 0.0  ;;  %v391_v42 = vadd.f32 %v1020_v39, %v788_v16 }
 0x221   :  { %v385_v43 = vpop.f32.mrf.mxu1 }
 0x222   :  { %v386_v44 = vadd.f32 %v788_v16, %v385_v43  ;;  %1071 = vmatprep.mubr.f32.mxu0 %v430_v40  ;;  %v433_v47 = vmax.f32 %v391_v42, 0.0 }
 0x223   :  { %v1023_v45 = vpop.f32.mrf.mxu1  ;;  %1072 = vmatmul.mubr.f32.gmra.mxu0 %v431_v41 }
 0x224   :  { %v432_v46 = vmax.f32 %v386_v44, 0.0  ;;  %v401_v48 = vadd.f32 %v1023_v45, %v788_v16 }
 0x225   :  { %v395_v49 = vpop.f32.mrf.mxu1 }
 0x226   :  { %v396_v50 = vadd.f32 %v788_v16, %v395_v49  ;;  %1074 = vmatprep.mubr.f32.mxu0 %v432_v46  ;;  %v435_v53 = vmax.f32 %v401_v48, 0.0 }
 0x227   :  { %v1026_v51 = vpop.f32.mrf.mxu1  ;;  %1075 = vmatmul.mubr.f32.gmra.mxu0 %v433_v47 }
 0x228   :  { %v434_v52 = vmax.f32 %v396_v50, 0.0  ;;  %v411_v54 = vadd.f32 %v1026_v51, %v788_v16 }
 0x229   :  { %v405_v55 = vpop.f32.mrf.mxu1 }
 0x22a   :  { %v406_v56 = vadd.f32 %v788_v16, %v405_v55  ;;  %1077 = vmatprep.mubr.f32.mxu0 %v434_v52  ;;  %v437_v59 = vmax.f32 %v411_v54, 0.0 }
 0x22b   :  { %v1029_v57 = vpop.f32.mrf.mxu1  ;;  %1078 = vmatmul.mubr.f32.gmra.mxu0 %v435_v53 }
 0x22c   :  { %v436_v58 = vmax.f32 %v406_v56, 0.0  ;;  %v421_v60 = vadd.f32 %v1029_v57, %v788_v16 }
 0x22d   :  { %v415_v12 = vpop.f32.mrf.mxu1 }
 0x22e   :  { %v416_v13 = vadd.f32 %v788_v16, %v415_v12  ;;  %1080 = vmatprep.mubr.f32.mxu0 %v436_v58  ;;  %v439_v15 = vmax.f32 %v421_v60, 0.0 }
 0x22f   :  { %1081 = vmatmul.mubr.f32.gmra.mxu0 %v437_v59 }
 0x230   :  { %v438_v14 = vmax.f32 %v416_v13, 0.0 }
 0x232   :  { %1083 = vmatprep.mubr.f32.mxu0 %v438_v14 }
 0x233   :  { %1084 = vmatmul.mubr.f32.gmra.mxu0 %v439_v15 }
 0x2d7   :  { %v1064_v17 = vpop.f32.mrf.mxu0 }
 0x2d9   :  { %v522_v18 = vpop.f32.mrf.mxu0 }
 0x2db   :  { %v1067_v19 = vpop.f32.mrf.mxu0 }
 0x2dd   :  { %v532_v20 = vpop.f32.mrf.mxu0 }
 0x2df   :  { %v1070_v21 = vpop.f32.mrf.mxu0 }
 0x2e1   :  { %v542_v22 = vpop.f32.mrf.mxu0 }
 0x2e3   :  { %v1073_v23 = vpop.f32.mrf.mxu0 }
 0x2e5   :  { %v552_v24 = vpop.f32.mrf.mxu0 }
 0x2e7   :  { %v1076_v25 = vpop.f32.mrf.mxu0 }
 0x2e9   :  { %v562_v26 = vpop.f32.mrf.mxu0 }
 0x2eb   :  { %v1079_v27 = vpop.f32.mrf.mxu0 }
 0x2ed   :  { %v572_v28 = vpop.f32.mrf.mxu0 }
 0x2ef   :  { %v1082_v29 = vpop.f32.mrf.mxu0 }
 0x2f1   :  { %v582_v16 = vpop.f32.mrf.mxu0 }
 0x2f3   :  { %v1085_v30 = vpop.f32.mrf.mxu0 }
 0x2f4   :  { %1086 = vmatprep.subr.mxu1 %v1085_v30 }
 0x2f5   :  { %v592_v31 = vpop.f32.mrf.mxu0  ;;  %1087 = vmatpush3.msra.mxu1 %v1085_v30 }
 0x2f6   :  { %1088 = vmatprep.subr.mxu1 %v592_v31 }
 0x2f7   :  { %1089 = vmatpush3.msra.mxu1 %v592_v31 }
 0x2f8   :  { %1090 = vmatprep.subr.mxu1 %v1082_v29 }
 0x2f9   :  { %1091 = vmatpush3.msra.mxu1 %v1082_v29 }
 0x2fa   :  { %1092 = vmatprep.subr.mxu1 %v582_v16 }
 0x2fb   :  { %1093 = vmatpush3.msra.mxu1 %v582_v16 }
 0x2fc   :  { %1094 = vmatprep.subr.mxu1 %v1079_v27 }
 0x2fd   :  { %1095 = vmatpush3.msra.mxu1 %v1079_v27 }
 0x2fe   :  { %1096 = vmatprep.subr.mxu1 %v572_v28 }
 0x2ff   :  { %1097 = vmatpush3.msra.mxu1 %v572_v28 }
 0x300   :  { %1098 = vmatprep.subr.mxu1 %v1076_v25 }
 0x301   :  { %1099 = vmatpush3.msra.mxu1 %v1076_v25 }
 0x302   :  { %1100 = vmatprep.subr.mxu1 %v562_v26 }
 0x303   :  { %1101 = vmatpush3.msra.mxu1 %v562_v26 }
 0x304   :  { %1102 = vmatprep.subr.mxu1 %v1073_v23 }
 0x305   :  { %1103 = vmatpush3.msra.mxu1 %v1073_v23 }
 0x306   :  { %1104 = vmatprep.subr.mxu1 %v552_v24 }
 0x307   :  { %1105 = vmatpush3.msra.mxu1 %v552_v24 }
 0x308   :  { %1106 = vmatprep.subr.mxu1 %v1070_v21 }
 0x309   :  { %1107 = vmatpush3.msra.mxu1 %v1070_v21 }
 0x30a   :  { %1108 = vmatprep.subr.mxu1 %v542_v22 }
 0x30b   :  { %1109 = vmatpush3.msra.mxu1 %v542_v22 }
 0x30c   :  { %1110 = vmatprep.subr.mxu1 %v1067_v19 }
 0x30d   :  { %1111 = vmatpush3.msra.mxu1 %v1067_v19 }
 0x30e   :  { %1112 = vmatprep.subr.mxu1 %v532_v20 }
 0x30f   :  { %1113 = vmatpush3.msra.mxu1 %v532_v20 }
 0x310   :  { %1114 = vmatprep.subr.mxu1 %v1064_v17 }
 0x311   :  { %1115 = vmatpush3.msra.mxu1 %v1064_v17 }
 0x312   :  { %1116 = vmatprep.subr.mxu1 %v522_v18 }
 0x313   :  { %1117 = vmatpush3.msra.mxu1 %v522_v18 }
 0x314   :  { %1119 = vmatmul.mubr.f32.vlgmr.msra.gmra.mxu1 %v1326_v61  ;;  %v789_v61 = vld [vmem:[%s1404_s5] ss:$0 sm:$0xff]  ;;  %s1263_s5 = smov [#allocation10]  }
 0x315   :  { %1121 = vmatprep.mubr.f32.mxu1 %v1328_v62  ;;  %s774_s18 = sshll.u32 %s1263_s5, 4  ;;  %s775_s18 = int_to_ptr.vmem [resolvable:$true] %s774_s18 }
 0x316   :  { %s1229_s19 = scalar_lea.vmem %s775_s18, 2048  ;;  %p1234_p7 = scmp.lt.s32.totalorder %s775_s18, %s775_s18 }
 0x317   :  { %p1230_p6 = scmp.ne.s32.totalorder %s775_s18, %s1229_s19  ;;  %p1235_p8 = scmp.lt.s32.totalorder %s1229_s19, %s1229_s19 }
 0x318   :  { %1122 = vmatmul.mubr.f32.gmra.mxu1 %v1332_v63 }
 0x319   :  { %1124 = vmatprep.mubr.f32.mxu1 %v1334_v0  ;;  %p1236_p9 = por %p1235_p8, %p1234_p7 }
 0x31b   :  { %p1237_p10 = pnand %p1236_p9, %p1230_p6 }
 0x31c   :  { %1125 = vmatmul.mubr.f32.gmra.mxu1 %v1338_v1 }
 0x31d   :  { %1127 = vmatprep.mubr.f32.mxu1 %v1340_v2 }
 0x320   :  { %1128 = vmatmul.mubr.f32.gmra.mxu1 %v1344_v3 }
 0x321   :  { %1130 = vmatprep.mubr.f32.mxu1 %v1346_v4 }
 0x324   :  { %1131 = vmatmul.mubr.f32.gmra.mxu1 %v1350_v5 }
 0x325   :  { %1133 = vmatprep.mubr.f32.mxu1 %v1352_v6 }
 0x328   :  { %1134 = vmatmul.mubr.f32.gmra.mxu1 %v1356_v7 }
 0x329   :  { %1136 = vmatprep.mubr.f32.mxu1 %v1358_v8 }
 0x32c   :  { %1137 = vmatmul.mubr.f32.gmra.mxu1 %v1362_v9 }
 0x32d   :  { %1139 = vmatprep.mubr.f32.mxu1 %v1364_v10 }
 0x330   :  { %1140 = vmatmul.mubr.f32.gmra.mxu1 %v1368_v11 }
 0x3d4   :  { %v1120_v62 = vpop.f32.mrf.mxu1 }
 0x3d5   :  { %v680_v63 = vadd.f32 %v1120_v62, %v789_v61 }
 0x3d6   :  { %v674_v0 = vpop.f32.mrf.mxu1 }
 0x3d7   :  { %754 = vst [vmem:[#allocation10 + $0x8] sm:$0xff] %v680_v63  ;;  %v675_v1 = vadd.f32 %v789_v61, %v674_v0 }
 0x3d8   :  { %v1123_v2 = vpop.f32.mrf.mxu1 }
 0x3d9   :  { %753 = vst [vmem:[#allocation10] sm:$0xff] %v675_v1  ;;  %v690_v3 = vadd.f32 %v1123_v2, %v789_v61 }
 0x3da   :  { %v684_v4 = vpop.f32.mrf.mxu1 }
 0x3db   :  { %756 = vst [vmem:[#allocation10 + $0x18] sm:$0xff] %v690_v3  ;;  %v685_v5 = vadd.f32 %v789_v61, %v684_v4 }
 0x3dc   :  { %v1126_v6 = vpop.f32.mrf.mxu1 }
 0x3dd   :  { %755 = vst [vmem:[#allocation10 + $0x10] sm:$0xff] %v685_v5  ;;  %v700_v7 = vadd.f32 %v1126_v6, %v789_v61 }
 0x3de   :  { %v694_v8 = vpop.f32.mrf.mxu1 }
 0x3df   :  { %758 = vst [vmem:[#allocation10 + $0x28] sm:$0xff] %v700_v7  ;;  %v695_v9 = vadd.f32 %v789_v61, %v694_v8 }
 0x3e0   :  { %v1129_v10 = vpop.f32.mrf.mxu1 }
 0x3e1   :  { %757 = vst [vmem:[#allocation10 + $0x20] sm:$0xff] %v695_v9  ;;  %v710_v11 = vadd.f32 %v1129_v10, %v789_v61 }
 0x3e2   :  { %v704_v32 = vpop.f32.mrf.mxu1 }
 0x3e3   :  { %760 = vst [vmem:[#allocation10 + $0x38] sm:$0xff] %v710_v11  ;;  %v705_v33 = vadd.f32 %v789_v61, %v704_v32 }
 0x3e4   :  { %v1132_v34 = vpop.f32.mrf.mxu1 }
 0x3e5   :  { %759 = vst [vmem:[#allocation10 + $0x30] sm:$0xff] %v705_v33  ;;  %v720_v35 = vadd.f32 %v1132_v34, %v789_v61 }
 0x3e6   :  { %v714_v36 = vpop.f32.mrf.mxu1 }
 0x3e7   :  { %762 = vst [vmem:[#allocation10 + $0x48] sm:$0xff] %v720_v35  ;;  %v715_v37 = vadd.f32 %v789_v61, %v714_v36 }
 0x3e8   :  { %v1135_v38 = vpop.f32.mrf.mxu1 }
 0x3e9   :  { %761 = vst [vmem:[#allocation10 + $0x40] sm:$0xff] %v715_v37  ;;  %v730_v39 = vadd.f32 %v1135_v38, %v789_v61 }
 0x3ea   :  { %v724_v40 = vpop.f32.mrf.mxu1 }
 0x3eb   :  { %764 = vst [vmem:[#allocation10 + $0x58] sm:$0xff] %v730_v39  ;;  %v725_v41 = vadd.f32 %v789_v61, %v724_v40 }
 0x3ec   :  { %v1138_v42 = vpop.f32.mrf.mxu1 }
 0x3ed   :  { %763 = vst [vmem:[#allocation10 + $0x50] sm:$0xff] %v725_v41  ;;  %v740_v43 = vadd.f32 %v1138_v42, %v789_v61 }
 0x3ee   :  { %v734_v44 = vpop.f32.mrf.mxu1 }
 0x3ef   :  { %766 = vst [vmem:[#allocation10 + $0x68] sm:$0xff] %v740_v43  ;;  %v735_v45 = vadd.f32 %v789_v61, %v734_v44 }
 0x3f0   :  { %v1141_v46 = vpop.f32.mrf.mxu1 }
 0x3f1   :  { %765 = vst [vmem:[#allocation10 + $0x60] sm:$0xff] %v735_v45  ;;  %v750_v47 = vadd.f32 %v1141_v46, %v789_v61 }
 0x3f2   :  { %v744_v48 = vpop.f32.mrf.mxu1 }
 0x3f3   :  { %768 = vst [vmem:[#allocation10 + $0x78] sm:$0xff] %v750_v47  ;;  %v745_v49 = vadd.f32 %v789_v61, %v744_v48 }
 0x3f5   :  { %767 = vst [vmem:[#allocation10 + $0x70] sm:$0xff] %v745_v49 }
 0x3f6   :  { %1240 = shalt.err (!%p1237_p10)
}
 0x3f7   :  { %780 = dma.vmem_to_hbm [thread:$0]  %s775_s18, 2048, %s1405_s6, [#allocation4], %s1259_s26, %s1259_s26, %s1260_s27  }
 0x3f8   :  { %1255 = dma.done.wait [#allocation4], 2048  }
 0x3f9   :  { %1256 = vsyncadd [#allocation4], 4294965248 }
 0x3fa   :  { %784 = vsyncpa [#allocation3], 1 }
 0x3fb   :  { %785 = vsyncpa [#allocation6], 1 }
 0x3fc   :  { %786 = vsyncpa [#allocation9], 1 }
 0x3fd   :  { %787 = vsyncpa [#allocation4], 1 }

</bundles_post_ra>
